<compile_context>
chip_gen: v6e
topology: v6e:2x2x1
jax: 0.10.0
libtpu: 0.0.40
codegen_flags: <defaults>
</compile_context>

<pallas_src>
import functools

import jax
import jax.numpy as jnp
from jax.experimental import pallas as pl
from jax.experimental.pallas import tpu as pltpu


_CompilerParams = getattr(pltpu, "CompilerParams", None) or getattr(
    pltpu, "TPUCompilerParams")
_CORE_PARALLEL = getattr(pltpu, "CORE_PARALLEL", "parallel")
_ARBITRARY = getattr(pltpu, "ARBITRARY", "arbitrary")


def _cdiv(a, b):
    return -(-a // b)


def _round_up(x, m):
    return _cdiv(x, m) * m


def _chip_config():
    """Generation-aware defaults: (num_tc_slices, target_block_bytes)."""
    try:
        kind = jax.devices()[0].device_kind.lower()
    except Exception:  # noqa: BLE001
        kind = ""
    if "v7" in kind or "7x" in kind:
        # v7x: 2 TensorCores/chip, ~3.2 TB/s HBM -> 4 MiB blocks keep the
        # ~0.35 us/step pipeline overhead <10% while staying well inside its
        # 32 MiB scoped / 64 MiB physical VMEM (2 inputs x 2 buffers = 16 MiB).
        return 2, 4 * 1024 * 1024
    # v5e/v6e: single TensorCore; 2 MiB blocks already sit at ~85% of the HBM
    # roofline and 2 inputs x 2 buffers x 2 MiB fits v5e's 16 MiB scoped VMEM.
    return 1, 2 * 1024 * 1024


def _sse_partial_kernel(yhat_ref, y_ref, out_ref, *, tile_rows, n_rows,
                        steps_per_slice, need_mask, acc_rows):
    s = pl.program_id(0)   # per-TensorCore partial-sum slice (v7x)
    i = pl.program_id(1)   # sequential reduction steps within the slice

    @pl.when(i == 0)
    def _():
        out_ref[...] = jnp.zeros_like(out_ref)

    d = yhat_ref[...].astype(jnp.float32) - y_ref[...].astype(jnp.float32)
    dd = d * d
    d_block = dd.shape[-1]

    def _acc(x):
        # (tile_rows, d_block) -> (acc_rows, d_block): pure VALU adds, no
        # per-step cross-sublane (XLU) reduce; the 8 -> 1 and cross-lane
        # reduce happen once outside the kernel.
        return jnp.sum(x.reshape(tile_rows // acc_rows, acc_rows, d_block),
                       axis=0)

    if not need_mask:
        out_ref[...] += _acc(dd)
    else:
        # Only the (rare) partial / clamped-duplicate block pays the mask.
        step = s * steps_per_slice + i          # unclamped global step
        row0 = step * tile_rows
        block_full = row0 + tile_rows <= n_rows

        @pl.when(block_full)
        def _():
            out_ref[...] += _acc(dd)

        @pl.when(jnp.logical_not(block_full))
        def _():
            row_ids = row0 + jax.lax.broadcasted_iota(
                jnp.int32, (tile_rows, 1), 0)
            out_ref[...] += _acc(jnp.where(row_ids < n_rows, dd, 0.0))


def rmse_loss(yhat, y, *, min_kernel_elems=1 << 20, target_block_bytes=None):
    """sqrt(mean((yhat - y)**2)) — matches torch.sqrt(nn.MSELoss()(yhat, y))."""
    assert yhat.shape == y.shape, "yhat and y must have identical shapes"
    n = int(yhat.size)
    assert n > 0, "RMSE of an empty tensor is undefined"

    # Tiny tensors: pallas_call launch + pipeline prologue dominate; XLA's
    # fused reduce is faster.  The kernel only pays off once HBM-bound.
    if n < min_kernel_elems:
        d = yhat.astype(jnp.float32) - y.astype(jnp.float32)
        return jnp.sqrt(jnp.sum(d * d) / jnp.float32(n))

    num_slices_pref, chip_block_bytes = _chip_config()
    if target_block_bytes is None:
        target_block_bytes = chip_block_bytes

    # Lane-dense presentation: flatten, kernel handles the 128-aligned prefix,
    # the <128-element tail (if any) is summed with plain jnp outside.
    yhat_flat = yhat.reshape(-1)
    y_flat = y.reshape(-1)
    if n % 512 == 0:
        lane_width = 512
    elif n % 256 == 0:
        lane_width = 256
    else:
        lane_width = 128
    n_pref = (n // lane_width) * lane_width

    tail_sse = jnp.float32(0.0)
    if n_pref < n:
        dt = (yhat_flat[n_pref:].astype(jnp.float32)
              - y_flat[n_pref:].astype(jnp.float32))
        tail_sse = jnp.sum(dt * dt)
    if n_pref == 0:
        return jnp.sqrt(tail_sse / jnp.float32(n))

    yhat2d = yhat_flat[:n_pref].reshape(n_pref // lane_width, lane_width)
    y2d = y_flat[:n_pref].reshape(n_pref // lane_width, lane_width)
    n_rows, d_block = yhat2d.shape

    itemsize = jnp.dtype(yhat2d.dtype).itemsize
    sublane_mult = 8 * max(1, 4 // max(1, itemsize))  # 8 f32 / 16 bf16 / 32 i8
    acc_rows = 8                                      # f32 accumulator tile

    row_bytes = d_block * itemsize
    tile_rows = max(sublane_mult,
                    (target_block_bytes // row_bytes) // sublane_mult
                    * sublane_mult)
    tile_rows = min(tile_rows, _round_up(n_rows, sublane_mult))
    total_steps = _cdiv(n_rows, tile_rows)

    def _run(num_slices, slice_semantic):
        num_slices = max(1, min(num_slices, total_steps))
        steps_per_slice = _cdiv(total_steps, num_slices)
        need_mask = num_slices * steps_per_slice * tile_rows > n_rows

        def in_map(s, i):
            # Padded (fully out-of-range) steps re-read the last valid block;
            # the in-kernel row mask zeroes their contribution.
            step = jnp.minimum(s * steps_per_slice + i, total_steps - 1)
            return (step, 0)

        kernel = functools.partial(
            _sse_partial_kernel,
            tile_rows=tile_rows, n_rows=n_rows,
            steps_per_slice=steps_per_slice,
            need_mask=need_mask, acc_rows=acc_rows)

        return pl.pallas_call(
            kernel,
            out_shape=jax.ShapeDtypeStruct((num_slices * acc_rows, d_block),
                                           jnp.float32),
            grid_spec=pltpu.PrefetchScalarGridSpec(
                num_scalar_prefetch=0,
                grid=(num_slices, steps_per_slice),
                in_specs=[pl.BlockSpec((tile_rows, d_block), in_map),
                          pl.BlockSpec((tile_rows, d_block), in_map)],
                out_specs=pl.BlockSpec((acc_rows, d_block),
                                       lambda s, i: (s, 0)),
            ),
            compiler_params=_CompilerParams(
                dimension_semantics=(slice_semantic, _ARBITRARY)),
            cost_estimate=pl.CostEstimate(
                flops=3 * n_pref,
                transcendentals=0,
                bytes_accessed=(2 * n_pref * itemsize
                                + 4 * num_slices * acc_rows * d_block)),
        )(yhat2d, y2d)

    if num_slices_pref > 1 and total_steps > 1:
        try:
            # v7x: genuinely shard the slice axis across both TensorCores.
            partials = _run(num_slices_pref, _CORE_PARALLEL)
        except Exception:  # fall back if CORE_PARALLEL lowering is unsupported
            partials = _run(1, _ARBITRARY)
    else:
        partials = _run(1, _ARBITRARY)

    # Single cross-sublane + cross-lane reduce, mean and sqrt: once, outside.
    sse = jnp.sum(partials) + tail_sse
    return jnp.sqrt(sse / jnp.float32(n))


if __name__ == "__main__":
    key = jax.random.PRNGKey(0)
    ks = jax.random.split(key, 8)

    def ref_rmse(a, b):
        d = a.astype(jnp.float32) - b.astype(jnp.float32)
        return jnp.sqrt(jnp.mean(d * d))

    # 1) Small tensors take the pure-jnp short-circuit (launch overhead wins).
    a = jax.random.normal(ks[0], (2, 4, 16, 16), dtype=jnp.float32)
    b = jax.random.normal(ks[1], (2, 4, 16, 16), dtype=jnp.float32)
    out = rmse_loss(a, b)
    jax.block_until_ready(out)
    assert jnp.allclose(out, ref_rmse(a, b), rtol=1e-5, atol=1e-6), "case 1"

    # 2) Force the Pallas kernel on the same tensors (single partially-masked
    #    block: 4 rows of 512 lanes inside an 8-row tile).
    out2 = rmse_loss(a, b, min_kernel_elems=0)
    jax.block_until_ready(out2)
    assert jnp.allclose(out2, ref_rmse(a, b), rtol=1e-5, atol=1e-6), "case 2"

    # 3) Multi-step sequential accumulation (lane-aligned, no mask on any step).
    a3 = jax.random.normal(ks[2], (4, 16, 128), dtype=jnp.float32)
    b3 = jax.random.normal(ks[3], (4, 16, 128), dtype=jnp.float32)
    out3 = rmse_loss(a3, b3, min_kernel_elems=0, target_block_bytes=8192)
    jax.block_until_ready(out3)
    assert jnp.allclose(out3, ref_rmse(a3, b3), rtol=1e-5, atol=1e-6), "case 3"

    # 4) Non-128-aligned size: kernel handles the aligned prefix (edge-row
    #    mask on the last block only), the <128-element tail is pure jnp.
    a4 = jax.random.normal(ks[4], (10, 130), dtype=jnp.float32)
    b4 = jax.random.normal(ks[5], (10, 130), dtype=jnp.float32)
    out4 = rmse_loss(a4, b4, min_kernel_elems=0, target_block_bytes=4096)
    jax.block_until_ready(out4)
    assert jnp.allclose(out4, ref_rmse(a4, b4), rtol=1e-5, atol=1e-6), "case 4"

    # 5) bf16 inputs (upcast + f32 accumulation inside the kernel).
    a5 = jax.random.normal(ks[6], (4, 16, 128), dtype=jnp.bfloat16)
    b5 = jax.random.normal(ks[7], (4, 16, 128), dtype=jnp.bfloat16)
    out5 = rmse_loss(a5, b5, min_kernel_elems=0)
    jax.block_until_ready(out5)
    assert jnp.allclose(out5, ref_rmse(a5, b5), rtol=2e-2, atol=1e-3), "case 5"

    print("KERNEL_OK")
</pallas_src>

<mosaic_0001>
module attributes {stable_mosaic.version = 11 : i64} {
  func.func @_sse_partial_kernel(%arg0: i32, %arg1: i32, %arg2: memref<8x512xf32, #tpu.memory_space<vmem>>, %arg3: memref<8x512xf32, #tpu.memory_space<vmem>>, %arg4: memref<8x512xf32, #tpu.memory_space<vmem>>) attributes {dimension_semantics = [#tpu.dimension_semantics<arbitrary>, #tpu.dimension_semantics<arbitrary>], iteration_bounds = array<i64: 1, 1>, scalar_prefetch = 0 : i64, scratch_operands = 0 : i64, tpu.core_type = #tpu.core_type<tc>, window_params = [{transform_indices = @transform_0, window_bounds = array<i64: 8, 512>}, {transform_indices = @transform_1, window_bounds = array<i64: 8, 512>}, {transform_indices = @transform_2, window_bounds = array<i64: 8, 512>}]} {
    %c0_i32 = arith.constant 0 : i32
    %0 = arith.cmpi eq, %arg1, %c0_i32 : i32
    %1 = arith.extui %0 : i1 to i32
    %c0_i32_0 = arith.constant 0 : i32
    %2 = arith.cmpi ne, %1, %c0_i32_0 : i32
    scf.if %2 {
      %cst = arith.constant 0.000000e+00 : f32
      %17 = vector.broadcast %cst : f32 to vector<8x512xf32>
      %c0_7 = arith.constant 0 : index
      %c0_8 = arith.constant 0 : index
      %18 = vector.load %arg4[%c0_7, %c0_8] : memref<8x512xf32, #tpu.memory_space<vmem>>, vector<8x512xf32>
      tpu.vector_store %arg4[%c0_7, %c0_8], %17 {strides = array<i32>} : memref<8x512xf32, #tpu.memory_space<vmem>>, vector<8x512xf32>,
    } else {
    }
    %c0 = arith.constant 0 : index
    %c0_1 = arith.constant 0 : index
    %3 = vector.load %arg2[%c0, %c0_1] : memref<8x512xf32, #tpu.memory_space<vmem>>, vector<8x512xf32>
    %c0_2 = arith.constant 0 : index
    %c0_3 = arith.constant 0 : index
    %4 = vector.load %arg3[%c0_2, %c0_3] : memref<8x512xf32, #tpu.memory_space<vmem>>, vector<8x512xf32>
    %5 = arith.subf %3, %4 : vector<8x512xf32>
    %6 = arith.mulf %5, %5 : vector<8x512xf32>
    %c1_i32 = arith.constant 1 : i32
    %7 = arith.muli %arg0, %c1_i32 : i32
    %8 = arith.addi %7, %arg1 : i32
    %c8_i32 = arith.constant 8 : i32
    %9 = arith.muli %8, %c8_i32 : i32
    %c8_i32_4 = arith.constant 8 : i32
    %10 = arith.addi %9, %c8_i32_4 : i32
    %c4_i32 = arith.constant 4 : i32
    %11 = arith.cmpi sle, %10, %c4_i32 : i32
    %12 = arith.extui %11 : i1 to i32
    %c0_i32_5 = arith.constant 0 : i32
    %13 = arith.cmpi ne, %12, %c0_i32_5 : i32
    scf.if %13 {
      %c0_7 = arith.constant 0 : index
      %c0_8 = arith.constant 0 : index
      %17 = vector.load %arg4[%c0_7, %c0_8] : memref<8x512xf32, #tpu.memory_space<vmem>>, vector<8x512xf32>
      %18 = vector.shape_cast %6 : vector<8x512xf32> to vector<1x8x512xf32>
      %cst = arith.constant dense<0.000000e+00> : vector<8x512xf32>
      %19 = vector.multi_reduction <add>, %18, %cst [0] : vector<1x8x512xf32> to vector<8x512xf32>
      %20 = arith.addf %17, %19 : vector<8x512xf32>
      %c0_9 = arith.constant 0 : index
      %c0_10 = arith.constant 0 : index
      %21 = vector.load %arg4[%c0_9, %c0_10] : memref<8x512xf32, #tpu.memory_space<vmem>>, vector<8x512xf32>
      tpu.vector_store %arg4[%c0_9, %c0_10], %20 {strides = array<i32>} : memref<8x512xf32, #tpu.memory_space<vmem>>, vector<8x512xf32>,
    } else {
    }
    %true = arith.constant true
    %14 = arith.xori %11, %true : i1
    %15 = arith.extui %14 : i1 to i32
    %c0_i32_6 = arith.constant 0 : i32
    %16 = arith.cmpi ne, %15, %c0_i32_6 : i32
    scf.if %16 {
      %17 = tpu.iota {dimensions = array<i32: 0>} : vector<8x1xi32>
      %18 = vector.broadcast %9 : i32 to vector<8x1xi32>
      %19 = arith.addi %18, %17 : vector<8x1xi32>
      %c0_7 = arith.constant 0 : index
      %c0_8 = arith.constant 0 : index
      %20 = vector.load %arg4[%c0_7, %c0_8] : memref<8x512xf32, #tpu.memory_space<vmem>>, vector<8x512xf32>
      %c4_i32_9 = arith.constant 4 : i32
      %21 = vector.broadcast %c4_i32_9 : i32 to vector<8x1xi32>
      %22 = arith.cmpi slt, %19, %21 : vector<8x1xi32>
      %cst = arith.constant 0.000000e+00 : f32
      %23 = vector.shape_cast %22 : vector<8x1xi1> to vector<8x1xi1>
      %24 = vector.broadcast %23 : vector<8x1xi1> to vector<8x512xi1>
      %25 = vector.broadcast %cst : f32 to vector<8x512xf32>
      %26 = arith.select %24, %6, %25 : vector<8x512xi1>, vector<8x512xf32>
      %27 = vector.shape_cast %26 : vector<8x512xf32> to vector<1x8x512xf32>
      %cst_10 = arith.constant dense<0.000000e+00> : vector<8x512xf32>
      %28 = vector.multi_reduction <add>, %27, %cst_10 [0] : vector<1x8x512xf32> to vector<8x512xf32>
      %29 = arith.addf %20, %28 : vector<8x512xf32>
      %c0_11 = arith.constant 0 : index
      %c0_12 = arith.constant 0 : index
      %30 = vector.load %arg4[%c0_11, %c0_12] : memref<8x512xf32, #tpu.memory_space<vmem>>, vector<8x512xf32>
      tpu.vector_store %arg4[%c0_11, %c0_12], %29 {strides = array<i32>} : memref<8x512xf32, #tpu.memory_space<vmem>>, vector<8x512xf32>,
    } else {
    }
    return
  }
  func.func @transform_0(%arg0: i32, %arg1: i32) -> (i32, i32) {
    %c1_i32 = arith.constant 1 : i32
    %0 = arith.muli %arg0, %c1_i32 : i32
    %1 = arith.addi %0, %arg1 : i32
    %c0_i32 = arith.constant 0 : i32
    %2 = arith.minsi %1, %c0_i32 : i32
    %c0_i32_0 = arith.constant 0 : i32
    %c0_i32_1 = arith.constant 0 : i32
    return %2, %c0_i32_0 : i32, i32
  }
  func.func @transform_1(%arg0: i32, %arg1: i32) -> (i32, i32) {
    %c1_i32 = arith.constant 1 : i32
    %0 = arith.muli %arg0, %c1_i32 : i32
    %1 = arith.addi %0, %arg1 : i32
    %c0_i32 = arith.constant 0 : i32
    %2 = arith.minsi %1, %c0_i32 : i32
    %c0_i32_0 = arith.constant 0 : i32
    %c0_i32_1 = arith.constant 0 : i32
    return %2, %c0_i32_0 : i32, i32
  }
  func.func @transform_2(%arg0: i32, %arg1: i32) -> (i32, i32) {
    %c0_i32 = arith.constant 0 : i32
    %c0_i32_0 = arith.constant 0 : i32
    return %arg0, %c0_i32 : i32, i32
  }
}

</mosaic_0001>

<bundles_post_ra>
// kernel: tpu_custom_call.1
= control target key start
LH: loop header
LB: loop body
LE: loop exit
PB: predicated region body
PF: predicated region fallthrough
CT: control target
= control target key end

     0   :  { %7 = vsyncpa [#allocation3], 0  ;;  %s301_s0 = inlined_call_operand.hbm [shape: f32[4,512], index: 0, kind: input, shape index: {}]   ;;  %s302_s1 = inlined_call_operand.hbm [shape: f32[4,512], index: 1, kind: input, shape index: {}]   ;;  %s303_s2 = inlined_call_operand.hbm [shape: f32[8,512], index: 2, kind: output, shape index: {}]  }
   0x1   :  { %8 = vsyncpa [#allocation6], 0 }
   0x2   :  { %9 = vsyncpa [#allocation4], 0 }
   0x3   :  { %21 = vsyncadd [#allocation3], 256  ;;  %s272_s9 = smov [#allocation2]  }
   0x4   :  { %s27_s10 = sshll.u32 %s272_s9, 4  ;;  %s28_s10 = int_to_ptr.vmem [resolvable:$true] %s27_s10 }
   0x5   :  { %s214_s11 = scalar_lea.vmem %s28_s10, 256  ;;  %s218_s12 = scalar_lea.vmem %s28_s10, 512 }
   0x6   :  { %p215_p0 = scmp.ne.s32.totalorder %s28_s10, %s214_s11  ;;  %p219_p1 = scmp.lt.s32.totalorder %s28_s10, %s28_s10 }
   0x7   :  { %p220_p2 = scmp.lt.s32.totalorder %s218_s12, %s214_s11 }
   0x9   :  { %p221_p3 = por %p220_p2, %p219_p1 }
   0xb   :  { %p222_p4 = pnand %p221_p3, %p215_p0 }
   0xd   :  { %225 = shalt.err (!%p222_p4)
}
   0xe   :  { %s273_s13 = smov 256   ;;  %s274_s14 = smov 16  }
   0xf   :  { %33 = dma.hbm_to_vmem [thread:$0]  %s301_s0, 256, %s28_s10, [#allocation3], %s273_s13, %s273_s13, %s274_s14  }
  0x10   :  { %45 = vsyncadd [#allocation6], 256  ;;  %s275_s17 = smov [#allocation5]  }
  0x11   :  { %s51_s18 = sshll.u32 %s275_s17, 4  ;;  %s52_s18 = int_to_ptr.vmem [resolvable:$true] %s51_s18 }
  0x12   :  { %s234_s19 = scalar_lea.vmem %s52_s18, 256  ;;  %s238_s20 = scalar_lea.vmem %s52_s18, 512 }
  0x13   :  { %p235_p5 = scmp.ne.s32.totalorder %s52_s18, %s234_s19  ;;  %p239_p6 = scmp.lt.s32.totalorder %s52_s18, %s52_s18 }
  0x14   :  { %p240_p7 = scmp.lt.s32.totalorder %s238_s20, %s234_s19 }
  0x16   :  { %p241_p8 = por %p240_p7, %p239_p6 }
  0x18   :  { %p242_p9 = pnand %p241_p8, %p235_p5 }
  0x1a   :  { %245 = shalt.err (!%p242_p9)
}
  0x1b   :  { %57 = dma.hbm_to_vmem [thread:$0]  %s302_s1, 256, %s52_s18, [#allocation6], %s273_s13, %s273_s13, %s274_s14  }
  0x1c   :  { %266 = dma.done.wait [#allocation3], 512  }
  0x1d   :  { %267 = vsyncadd [#allocation3], 4294966784 }
  0x1e   :  { %268 = dma.done.wait [#allocation6], 512  }
  0x1f   :  { %269 = vsyncadd [#allocation6], 4294966784  ;;  %v141_v0 = vlaneseq  ;;  %v86_v1 = vld [vmem:[#allocation2] sm:$0xff]  ;;  %v88_v2 = vld [vmem:[#allocation2 + $0x10] sm:$0xff]  ;;  %s276_s0 = smov [#allocation7]  }
  0x20   :  { %v90_v3 = vld [vmem:[#allocation5] sm:$0xff]  ;;  %v92_v4 = vld [vmem:[#allocation5 + $0x10] sm:$0xff]  ;;  %v87_v7 = vld [vmem:[#allocation2 + $0x8] sm:$0xff]  ;;  %s186_s1 = sshll.u32 %s276_s0, 4  ;;  %s187_s1 = int_to_ptr.vmem [resolvable:$true] %s186_s1 }
  0x21   :  { %v94_v5 = vsub.f32 %v86_v1, %v90_v3  ;;  %v142_v6 = vshrl.u32 %v141_v0, 7  ;;  %v89_v8 = vld [vmem:[#allocation2 + $0x18] sm:$0xff]  ;;  %v96_v9 = vsub.f32 %v88_v2, %v92_v4  ;;  %v91_v10 = vld [vmem:[#allocation5 + $0x8] sm:$0xff]  ;;  %s246_s23 = scalar_lea.vmem %s187_s1, 512  ;;  %p251_p11 = scmp.lt.s32.totalorder %s187_s1, %s187_s1 }
  0x22   :  { %v93_v11 = vld [vmem:[#allocation5 + $0x18] sm:$0xff]  ;;  %v95_v13 = vsub.f32 %v87_v7, %v91_v10  ;;  %p247_p10 = scmp.ne.s32.totalorder %s187_s1, %s246_s23  ;;  %p252_p12 = scmp.lt.s32.totalorder %s246_s23, %s246_s23 }
  0x23   :  { %v98_v12 = vmul.f32 %v94_v5, %v94_v5  ;;  %v97_v14 = vsub.f32 %v89_v8, %v93_v11  ;;  %v100_v15 = vmul.f32 %v96_v9, %v96_v9  ;;  %vm149_vm0 = vcmp.lt.s32.totalorder %v142_v6, 4 }
  0x24   :  { %v99_v16 = vmul.f32 %v95_v13, %v95_v13  ;;  %p253_p13 = por %p252_p12, %p251_p11 }
  0x25   :  { %v101_v17 = vmul.f32 %v97_v14, %v97_v14  ;;  %v156_v18 = vcombine.low %v98_v12, %v100_v15  ;;  %v157_v19 = vcombine.high %v98_v12, %v100_v15 }
  0x26   :  { %p254_p0 = pnand %p253_p13, %p247_p10 }
  0x27   :  { %v158_v20 = vcombine.low %v99_v16, %v101_v17  ;;  %v159_v21 = vcombine.high %v99_v16, %v101_v17  ;;  %v164_v22 = vsel %vm149_vm0, %v156_v18, 0.0  ;;  %v165_v23 = vsel %vm149_vm0, %v157_v19, 0.0 }
  0x28   :  { %176 = vst [vmem:[#allocation7] sm:$0xff] %v164_v22  ;;  %177 = vst [vmem:[#allocation7 + $0x8] sm:$0xff] %v165_v23 }
  0x29   :  { %v166_v24 = vsel %vm149_vm0, %v158_v20, 0.0  ;;  %v167_v25 = vsel %vm149_vm0, %v159_v21, 0.0 }
  0x2a   :  { %178 = vst [vmem:[#allocation7 + $0x10] sm:$0xff] %v166_v24  ;;  %179 = vst [vmem:[#allocation7 + $0x18] sm:$0xff] %v167_v25 }
  0x2b   :  { %257 = shalt.err (!%p254_p0)
}
  0x2c   :  { %189 = dma.vmem_to_hbm [thread:$0]  %s187_s1, 512, %s303_s2, [#allocation4]  }
  0x2d   :  { %270 = dma.done.wait [#allocation4], 512  }
  0x2e   :  { %271 = vsyncadd [#allocation4], 4294966784 }
  0x2f   :  { %193 = vsyncpa [#allocation3], 1 }
  0x30   :  { %194 = vsyncpa [#allocation6], 1 }
  0x31   :  { %195 = vsyncpa [#allocation4], 1 }

</bundles_post_ra>
